<compile_context>
chip_gen: v7x
topology: tpu7x:2x2x1
jax: 0.10.0
libtpu: 0.0.40
codegen_flags: <defaults>
</compile_context>

<pallas_src>
import functools

import jax
import jax.numpy as jnp
from jax.experimental import pallas as pl
from jax.experimental.pallas import tpu as pltpu

LANE = 128


# --------------------------------------------------------------------------
# Shared tile compute: conv as K shifted matmuls (fp32 accumulation)
# --------------------------------------------------------------------------
def _conv_tile(w_ref, x_ref, h_ref, K, tile_l):
    """w_ref: (K, C_out, C_in) resident; x_ref: (1, C_in, tile_l) tile;
    h_ref: (1, 1, C_in, Kh) halo columns from the next tile."""
    xw = x_ref[0]                                   # (C_in, tile_l)
    halo = h_ref[0, 0]                              # (C_in, Kh)
    xfull = jnp.concatenate([xw, halo], axis=-1)    # (C_in, tile_l + Kh)
    y = jnp.dot(w_ref[0], xfull[:, 0:tile_l], preferred_element_type=jnp.float32)
    for t in range(1, K):
        y = y + jnp.dot(w_ref[t], xfull[:, t:t + tile_l],
                        preferred_element_type=jnp.float32)
    return y                                        # (C_out, tile_l) fp32


# --------------------------------------------------------------------------
# Phase 1: stats only (per-tile per-channel sum and mean-shifted M2)
# --------------------------------------------------------------------------
def _stats_kernel(w_ref, x_ref, h_ref, stats_ref, *, K, tile_l, l_out, relu):
    j = pl.program_id(1)
    y = _conv_tile(w_ref, x_ref, h_ref, K, tile_l)
    if relu:
        y = jnp.maximum(y, 0.0)
    # Mask the L-padding lanes of the (possibly partial) last tile.
    lane_idx = jax.lax.broadcasted_iota(jnp.int32, (1, tile_l), 1)
    valid = lane_idx < (l_out - j * tile_l)
    cnt = jnp.minimum(l_out - j * tile_l, tile_l).astype(jnp.float32)
    ym = jnp.where(valid, y, 0.0)
    s = jnp.sum(ym, axis=-1, keepdims=True)         # (C_out, 1)
    mu = s / cnt
    d = jnp.where(valid, y - mu, 0.0)
    m2 = jnp.sum(d * d, axis=-1, keepdims=True)     # (C_out, 1)
    # Single (C_out, 2) output block per tile (one small DMA per grid step).
    stats_ref[0, 0, :, 0:1] = s
    stats_ref[0, 0, :, 1:2] = m2


# --------------------------------------------------------------------------
# Phase 2: recompute conv + ReLU, fuse BN affine, write NCL output directly
# --------------------------------------------------------------------------
def _apply_kernel(w_ref, scale_ref, shift_ref, x_ref, h_ref, o_ref, *,
                  K, tile_l, relu):
    y = _conv_tile(w_ref, x_ref, h_ref, K, tile_l)
    if relu:
        y = jnp.maximum(y, 0.0)
    o_ref[0] = (y * scale_ref[...] + shift_ref[...]).astype(o_ref.dtype)


# --------------------------------------------------------------------------
# Wrapper
# --------------------------------------------------------------------------
def batch_norm_conv(x, w, gamma, beta, *, relu=True, eps=1e-5,
                    max_tile=2048, vmem_budget=24 * 1024 * 1024):
    """x: (N, C_in, L), w: (C_out, C_in, K), gamma/beta: (C_out,)."""
    N, C_in, L = x.shape
    C_out, C_in_w, K = w.shape
    assert C_in == C_in_w and K >= 1 and K - 1 <= LANE
    pad = K // 2
    Lp = L + 2 * pad
    L_out = Lp - K + 1                   # == L for odd K (PyTorch output length)
    itemsize = jnp.dtype(x.dtype).itemsize

    # ---- tile size: multiple of 128 lanes, VMEM-budgeted, balanced --------
    per_lane = 2 * (C_in + C_out) * itemsize        # double-buffered x + out
    w_bytes = 2 * K * C_out * C_in * itemsize       # resident folded weight
    avail = max(vmem_budget - w_bytes, per_lane * LANE)
    tl = max(LANE, min(max_tile, ((avail // per_lane) // LANE) * LANE))
    tl = min(tl, pl.cdiv(L_out, LANE) * LANE)       # don't exceed problem size
    num_j = pl.cdiv(L_out, tl)
    tl = pl.cdiv(pl.cdiv(L_out, num_j), LANE) * LANE  # rebalance partial tile
    num_j = pl.cdiv(L_out, tl)
    L_out_pad = num_j * tl

    # ---- cheap layout plumbing: pad x, build tiny (K-1)-column halo -------
    Kh = max(K - 1, 1)
    Lx = (num_j + 1) * tl
    x_big = jnp.pad(x, ((0, 0), (0, 0), (pad, Lx - L - pad)))   # (N, C_in, Lx)
    halo = x_big.reshape(N, C_in, num_j + 1, tl)[:, :, 1:, :Kh]
    halo = halo.transpose(0, 2, 1, 3)               # (N, num_j, C_in, Kh), tiny
    w3 = jnp.transpose(w, (2, 0, 1))                # (K, C_out, C_in)

    grid = (N, num_j)
    w_spec = pl.BlockSpec((K, C_out, C_in), lambda n, j: (0, 0, 0))   # resident
    x_spec = pl.BlockSpec((1, C_in, tl), lambda n, j: (n, 0, j))
    h_spec = pl.BlockSpec((1, 1, C_in, Kh), lambda n, j: (n, j, 0, 0))
    cparams = pltpu.CompilerParams(
        dimension_semantics=("parallel", "parallel"),
        vmem_limit_bytes=48 * 1024 * 1024)

    flops = 2 * K * C_out * C_in * N * L_out_pad
    x_bytes = (N * num_j * (tl + Kh) * C_in + K * C_out * C_in) * itemsize

    # ---- phase 1: per-tile per-channel (sum, mean-shifted M2) -------------
    stats = pl.pallas_call(
        functools.partial(_stats_kernel, K=K, tile_l=tl, l_out=L_out, relu=relu),
        grid=grid,
        in_specs=[w_spec, x_spec, h_spec],
        out_specs=pl.BlockSpec((1, 1, C_out, 2), lambda n, j: (n, j, 0, 0)),
        out_shape=jax.ShapeDtypeStruct((N, num_j, C_out, 2), jnp.float32),
        compiler_params=cparams,
        cost_estimate=pl.CostEstimate(
            flops=flops, transcendentals=0,
            bytes_accessed=x_bytes + N * num_j * C_out * 2 * 4),
    )(w3, x_big, halo)

    # ---- tiny C_out-sized finalize (Chan's parallel-variance combine) -----
    cnt = jnp.minimum(tl, L_out - jnp.arange(num_j) * tl).astype(jnp.float32)
    cnt = cnt[None, :, None]                        # (1, num_j, 1)
    s = stats[..., 0]                               # (N, num_j, C_out)
    m2 = stats[..., 1]
    total = float(N * L_out)
    mean = jnp.sum(s, axis=(0, 1)) / total          # (C_out,)
    tile_mu = s / cnt
    M2 = jnp.sum(m2, axis=(0, 1)) + jnp.sum(cnt * (tile_mu - mean) ** 2,
                                            axis=(0, 1))
    var = M2 / total                                # biased (training) variance
    inv = jax.lax.rsqrt(var + eps)
    g32 = gamma.astype(jnp.float32)
    b32 = beta.astype(jnp.float32)
    scale = (g32 * inv).reshape(C_out, 1)
    shift = (b32 - mean * g32 * inv).reshape(C_out, 1)

    # ---- phase 2: fused conv + ReLU + affine, output already in NCL -------
    out_full = pl.pallas_call(
        functools.partial(_apply_kernel, K=K, tile_l=tl, relu=relu),
        grid=grid,
        in_specs=[w_spec,
                  pl.BlockSpec((C_out, 1), lambda n, j: (0, 0)),
                  pl.BlockSpec((C_out, 1), lambda n, j: (0, 0)),
                  x_spec, h_spec],
        out_specs=pl.BlockSpec((1, C_out, tl), lambda n, j: (n, 0, j)),
        out_shape=jax.ShapeDtypeStruct((N, C_out, L_out_pad), x.dtype),
        compiler_params=cparams,
        cost_estimate=pl.CostEstimate(
            flops=flops, transcendentals=0,
            bytes_accessed=x_bytes + N * L_out_pad * C_out * itemsize
            + 2 * C_out * 4),
    )(w3, scale, shift, x_big, halo)

    if L_out_pad != L_out:
        # TODO(synk): emit a masked partial last block instead of this slice.
        out_full = out_full[:, :, :L_out]
    return out_full


# --------------------------------------------------------------------------
# Pure-JAX reference mirroring the PyTorch module (training mode)
# --------------------------------------------------------------------------
def _reference(x, w, gamma, beta, *, relu=True, eps=1e-5):
    K = w.shape[2]
    y = jax.lax.conv_general_dilated(
        x, w, window_strides=(1,), padding=[(K // 2, K // 2)],
        dimension_numbers=("NCH", "OIH", "NCH"),
    )
    if relu:
        y = jnp.maximum(y, 0.0)
    mean = y.mean(axis=(0, 2), keepdims=True)
    var = ((y - mean) ** 2).mean(axis=(0, 2), keepdims=True)
    return (y - mean) * jax.lax.rsqrt(var + eps) * gamma.reshape(1, -1, 1) \
        + beta.reshape(1, -1, 1)


if __name__ == "__main__":
    key = jax.random.PRNGKey(0)
    k_x, k_w, k_g, k_b = jax.random.split(key, 4)

    N, C_in, C_out, L, K = 2, 4, 8, 16, 3

    x = jax.random.normal(k_x, (N, C_in, L), dtype=jnp.float32)
    w = jax.random.normal(k_w, (C_out, C_in, K), dtype=jnp.float32) * 0.2
    gamma = 1.0 + 0.1 * jax.random.normal(k_g, (C_out,), dtype=jnp.float32)
    beta = 0.1 * jax.random.normal(k_b, (C_out,), dtype=jnp.float32)

    fwd = jax.jit(functools.partial(batch_norm_conv, relu=True))
    out = fwd(x, w, gamma, beta)
    out = jax.block_until_ready(out)

    ref = _reference(x, w, gamma, beta, relu=True)
    assert out.shape == (N, C_out, L), out.shape
    assert jnp.allclose(out, ref, atol=1e-4, rtol=1e-4), "mismatch vs reference"

    print("KERNEL_OK")
</pallas_src>

<mosaic_0001>
module attributes {stable_mosaic.version = 11 : i64} {
  func.func @_stats_kernel(%arg0: i32, %arg1: i32, %arg2: memref<3x8x4xf32, #tpu.memory_space<vmem>>, %arg3: memref<1x4x128xf32, #tpu.memory_space<vmem>>, %arg4: memref<1x1x4x2xf32, #tpu.memory_space<vmem>>, %arg5: memref<1x1x8x2xf32, #tpu.memory_space<vmem>>) attributes {dimension_semantics = [#tpu.dimension_semantics<parallel>, #tpu.dimension_semantics<parallel>], iteration_bounds = array<i64: 2, 1>, scalar_prefetch = 0 : i64, scratch_operands = 0 : i64, tpu.core_type = #tpu.core_type<tc>, window_params = [{pipeline_mode = #tpu.pipeline_mode<synchronous>, transform_indices = @transform_0, window_bounds = array<i64: 3, 8, 4>}, {transform_indices = @transform_1, window_bounds = array<i64: 1, 4, 128>}, {transform_indices = @transform_2, window_bounds = array<i64: 1, 1, 4, 2>}, {transform_indices = @transform_3, window_bounds = array<i64: 1, 1, 8, 2>}]} {
    %c0 = arith.constant 0 : index
    %c0_0 = arith.constant 0 : index
    %c0_1 = arith.constant 0 : index
    %0 = vector.load %arg3[%c0, %c0_0, %c0_1] : memref<1x4x128xf32, #tpu.memory_space<vmem>>, vector<1x4x128xf32>
    %1 = vector.shape_cast %0 : vector<1x4x128xf32> to vector<4x128xf32>
    %c0_2 = arith.constant 0 : index
    %c0_3 = arith.constant 0 : index
    %c0_4 = arith.constant 0 : index
    %c0_5 = arith.constant 0 : index
    %2 = vector.load %arg4[%c0_2, %c0_3, %c0_4, %c0_5] : memref<1x1x4x2xf32, #tpu.memory_space<vmem>>, vector<1x1x4x2xf32>
    %3 = vector.shape_cast %2 : vector<1x1x4x2xf32> to vector<4x2xf32>
    %4 = tpu.concatenate %1, %3 in 1 : vector<4x128xf32>, vector<4x2xf32> -> vector<4x130xf32>
    %c0_6 = arith.constant 0 : index
    %c0_7 = arith.constant 0 : index
    %c0_8 = arith.constant 0 : index
    %5 = vector.load %arg2[%c0_6, %c0_7, %c0_8] : memref<3x8x4xf32, #tpu.memory_space<vmem>>, vector<1x8x4xf32>
    %6 = vector.shape_cast %5 : vector<1x8x4xf32> to vector<8x4xf32>
    %7 = vector.extract_strided_slice %4 {offsets = [0, 0], sizes = [4, 128], strides = [1, 1]} : vector<4x130xf32> to vector<4x128xf32>
    %cst = arith.constant dense<0.000000e+00> : vector<8x128xf32>
    %8 = tpu.matmul %6, %7, %cst {dimension_numbers = #tpu.dot_dimension_numbers<[1], [0], [0], [1], [0, 0, 1, 1], [], []>} : vector<8x4xf32>, vector<4x128xf32>, vector<8x128xf32> -> vector<8x128xf32>
    %c1 = arith.constant 1 : index
    %c0_9 = arith.constant 0 : index
    %c0_10 = arith.constant 0 : index
    %9 = vector.load %arg2[%c1, %c0_9, %c0_10] : memref<3x8x4xf32, #tpu.memory_space<vmem>>, vector<1x8x4xf32>
    %10 = vector.shape_cast %9 : vector<1x8x4xf32> to vector<8x4xf32>
    %11 = vector.extract_strided_slice %4 {offsets = [0, 1], sizes = [4, 128], strides = [1, 1]} : vector<4x130xf32> to vector<4x128xf32>
    %cst_11 = arith.constant dense<0.000000e+00> : vector<8x128xf32>
    %12 = tpu.matmul %10, %11, %cst_11 {dimension_numbers = #tpu.dot_dimension_numbers<[1], [0], [0], [1], [0, 0, 1, 1], [], []>} : vector<8x4xf32>, vector<4x128xf32>, vector<8x128xf32> -> vector<8x128xf32>
    %13 = arith.addf %8, %12 : vector<8x128xf32>
    %c2 = arith.constant 2 : index
    %c0_12 = arith.constant 0 : index
    %c0_13 = arith.constant 0 : index
    %14 = vector.load %arg2[%c2, %c0_12, %c0_13] : memref<3x8x4xf32, #tpu.memory_space<vmem>>, vector<1x8x4xf32>
    %15 = vector.shape_cast %14 : vector<1x8x4xf32> to vector<8x4xf32>
    %16 = vector.extract_strided_slice %4 {offsets = [0, 2], sizes = [4, 128], strides = [1, 1]} : vector<4x130xf32> to vector<4x128xf32>
    %cst_14 = arith.constant dense<0.000000e+00> : vector<8x128xf32>
    %17 = tpu.matmul %15, %16, %cst_14 {dimension_numbers = #tpu.dot_dimension_numbers<[1], [0], [0], [1], [0, 0, 1, 1], [], []>} : vector<8x4xf32>, vector<4x128xf32>, vector<8x128xf32> -> vector<8x128xf32>
    %18 = arith.addf %13, %17 : vector<8x128xf32>
    %cst_15 = arith.constant 0.000000e+00 : f32
    %19 = vector.broadcast %cst_15 : f32 to vector<8x128xf32>
    %20 = arith.maximumf %18, %19 : vector<8x128xf32>
    %21 = tpu.iota {dimensions = array<i32: 1>} : vector<1x128xi32>
    %c128_i32 = arith.constant 128 : i32
    %22 = arith.muli %arg1, %c128_i32 : i32
    %c16_i32 = arith.constant 16 : i32
    %23 = arith.subi %c16_i32, %22 : i32
    %24 = vector.broadcast %23 : i32 to vector<1x128xi32>
    %25 = arith.cmpi slt, %21, %24 : vector<1x128xi32>
    %c128_i32_16 = arith.constant 128 : i32
    %26 = arith.muli %arg1, %c128_i32_16 : i32
    %c16_i32_17 = arith.constant 16 : i32
    %27 = arith.subi %c16_i32_17, %26 : i32
    %c128_i32_18 = arith.constant 128 : i32
    %28 = arith.minsi %27, %c128_i32_18 : i32
    %29 = arith.sitofp %28 : i32 to f32
    %cst_19 = arith.constant 0.000000e+00 : f32
    %30 = vector.shape_cast %25 : vector<1x128xi1> to vector<1x128xi1>
    %31 = vector.broadcast %30 : vector<1x128xi1> to vector<8x128xi1>
    %32 = vector.broadcast %cst_19 : f32 to vector<8x128xf32>
    %33 = arith.select %31, %20, %32 : vector<8x128xi1>, vector<8x128xf32>
    %cst_20 = arith.constant dense<0.000000e+00> : vector<8xf32>
    %34 = vector.multi_reduction <add>, %33, %cst_20 [1] : vector<8x128xf32> to vector<8xf32>
    %35 = vector.shape_cast %34 : vector<8xf32> to vector<8x1xf32>
    %36 = vector.broadcast %29 : f32 to vector<8x1xf32>
    %37 = arith.divf %35, %36 : vector<8x1xf32>
    %38 = vector.broadcast %37 : vector<8x1xf32> to vector<8x128xf32>
    %39 = arith.subf %20, %38 : vector<8x128xf32>
    %cst_21 = arith.constant 0.000000e+00 : f32
    %40 = vector.shape_cast %25 : vector<1x128xi1> to vector<1x128xi1>
    %41 = vector.broadcast %40 : vector<1x128xi1> to vector<8x128xi1>
    %42 = vector.broadcast %cst_21 : f32 to vector<8x128xf32>
    %43 = arith.select %41, %39, %42 : vector<8x128xi1>, vector<8x128xf32>
    %44 = arith.mulf %43, %43 : vector<8x128xf32>
    %cst_22 = arith.constant dense<0.000000e+00> : vector<8xf32>
    %45 = vector.multi_reduction <add>, %44, %cst_22 [1] : vector<8x128xf32> to vector<8xf32>
    %46 = vector.shape_cast %45 : vector<8xf32> to vector<8x1xf32>
    %c0_23 = arith.constant 0 : index
    %c0_24 = arith.constant 0 : index
    %c0_25 = arith.constant 0 : index
    %c0_26 = arith.constant 0 : index
    %47 = vector.load %arg5[%c0_23, %c0_24, %c0_25, %c0_26] : memref<1x1x8x2xf32, #tpu.memory_space<vmem>>, vector<1x1x8x1xf32>
    %48 = vector.shape_cast %47 : vector<1x1x8x1xf32> to vector<8x1xf32>
    %49 = vector.shape_cast %35 : vector<8x1xf32> to vector<1x1x8x1xf32>
    tpu.vector_store %arg5[%c0_23, %c0_24, %c0_25, %c0_26], %49 {strides = array<i32>} : memref<1x1x8x2xf32, #tpu.memory_space<vmem>>, vector<1x1x8x1xf32>,
    %c0_27 = arith.constant 0 : index
    %c0_28 = arith.constant 0 : index
    %c0_29 = arith.constant 0 : index
    %c1_30 = arith.constant 1 : index
    %50 = vector.load %arg5[%c0_27, %c0_28, %c0_29, %c1_30] : memref<1x1x8x2xf32, #tpu.memory_space<vmem>>, vector<1x1x8x1xf32>
    %51 = vector.shape_cast %50 : vector<1x1x8x1xf32> to vector<8x1xf32>
    %52 = vector.shape_cast %46 : vector<8x1xf32> to vector<1x1x8x1xf32>
    tpu.vector_store %arg5[%c0_27, %c0_28, %c0_29, %c1_30], %52 {strides = array<i32>} : memref<1x1x8x2xf32, #tpu.memory_space<vmem>>, vector<1x1x8x1xf32>,
    return
  }
  func.func @transform_0(%arg0: i32, %arg1: i32) -> (i32, i32, i32) {
    %c0_i32 = arith.constant 0 : i32
    %c0_i32_0 = arith.constant 0 : i32
    %c0_i32_1 = arith.constant 0 : i32
    %c0_i32_2 = arith.constant 0 : i32
    return %c0_i32, %c0_i32_0, %c0_i32_1 : i32, i32, i32
  }
  func.func @transform_1(%arg0: i32, %arg1: i32) -> (i32, i32, i32) {
    %c0_i32 = arith.constant 0 : i32
    %c0_i32_0 = arith.constant 0 : i32
    return %arg0, %c0_i32, %arg1 : i32, i32, i32
  }
  func.func @transform_2(%arg0: i32, %arg1: i32) -> (i32, i32, i32, i32) {
    %c0_i32 = arith.constant 0 : i32
    %c0_i32_0 = arith.constant 0 : i32
    %c0_i32_1 = arith.constant 0 : i32
    return %arg0, %arg1, %c0_i32, %c0_i32_0 : i32, i32, i32, i32
  }
  func.func @transform_3(%arg0: i32, %arg1: i32) -> (i32, i32, i32, i32) {
    %c0_i32 = arith.constant 0 : i32
    %c0_i32_0 = arith.constant 0 : i32
    %c0_i32_1 = arith.constant 0 : i32
    return %arg0, %arg1, %c0_i32, %c0_i32_0 : i32, i32, i32, i32
  }
}

module attributes {stable_mosaic.version = 11 : i64} {
  func.func @_apply_kernel(%arg0: i32, %arg1: i32, %arg2: memref<3x8x4xf32, #tpu.memory_space<vmem>>, %arg3: memref<8x1xf32, #tpu.memory_space<vmem>>, %arg4: memref<8x1xf32, #tpu.memory_space<vmem>>, %arg5: memref<1x4x128xf32, #tpu.memory_space<vmem>>, %arg6: memref<1x1x4x2xf32, #tpu.memory_space<vmem>>, %arg7: memref<1x8x128xf32, #tpu.memory_space<vmem>>) attributes {dimension_semantics = [#tpu.dimension_semantics<parallel>, #tpu.dimension_semantics<parallel>], iteration_bounds = array<i64: 2, 1>, scalar_prefetch = 0 : i64, scratch_operands = 0 : i64, tpu.core_type = #tpu.core_type<tc>, window_params = [{pipeline_mode = #tpu.pipeline_mode<synchronous>, transform_indices = @transform_0, window_bounds = array<i64: 3, 8, 4>}, {pipeline_mode = #tpu.pipeline_mode<synchronous>, transform_indices = @transform_1, window_bounds = array<i64: 8, 1>}, {pipeline_mode = #tpu.pipeline_mode<synchronous>, transform_indices = @transform_2, window_bounds = array<i64: 8, 1>}, {transform_indices = @transform_3, window_bounds = array<i64: 1, 4, 128>}, {transform_indices = @transform_4, window_bounds = array<i64: 1, 1, 4, 2>}, {transform_indices = @transform_5, window_bounds = array<i64: 1, 8, 128>}]} {
    %c0 = arith.constant 0 : index
    %c0_0 = arith.constant 0 : index
    %c0_1 = arith.constant 0 : index
    %0 = vector.load %arg5[%c0, %c0_0, %c0_1] : memref<1x4x128xf32, #tpu.memory_space<vmem>>, vector<1x4x128xf32>
    %1 = vector.shape_cast %0 : vector<1x4x128xf32> to vector<4x128xf32>
    %c0_2 = arith.constant 0 : index
    %c0_3 = arith.constant 0 : index
    %c0_4 = arith.constant 0 : index
    %c0_5 = arith.constant 0 : index
    %2 = vector.load %arg6[%c0_2, %c0_3, %c0_4, %c0_5] : memref<1x1x4x2xf32, #tpu.memory_space<vmem>>, vector<1x1x4x2xf32>
    %3 = vector.shape_cast %2 : vector<1x1x4x2xf32> to vector<4x2xf32>
    %4 = tpu.concatenate %1, %3 in 1 : vector<4x128xf32>, vector<4x2xf32> -> vector<4x130xf32>
    %c0_6 = arith.constant 0 : index
    %c0_7 = arith.constant 0 : index
    %c0_8 = arith.constant 0 : index
    %5 = vector.load %arg2[%c0_6, %c0_7, %c0_8] : memref<3x8x4xf32, #tpu.memory_space<vmem>>, vector<1x8x4xf32>
    %6 = vector.shape_cast %5 : vector<1x8x4xf32> to vector<8x4xf32>
    %7 = vector.extract_strided_slice %4 {offsets = [0, 0], sizes = [4, 128], strides = [1, 1]} : vector<4x130xf32> to vector<4x128xf32>
    %cst = arith.constant dense<0.000000e+00> : vector<8x128xf32>
    %8 = tpu.matmul %6, %7, %cst {dimension_numbers = #tpu.dot_dimension_numbers<[1], [0], [0], [1], [0, 0, 1, 1], [], []>} : vector<8x4xf32>, vector<4x128xf32>, vector<8x128xf32> -> vector<8x128xf32>
    %c1 = arith.constant 1 : index
    %c0_9 = arith.constant 0 : index
    %c0_10 = arith.constant 0 : index
    %9 = vector.load %arg2[%c1, %c0_9, %c0_10] : memref<3x8x4xf32, #tpu.memory_space<vmem>>, vector<1x8x4xf32>
    %10 = vector.shape_cast %9 : vector<1x8x4xf32> to vector<8x4xf32>
    %11 = vector.extract_strided_slice %4 {offsets = [0, 1], sizes = [4, 128], strides = [1, 1]} : vector<4x130xf32> to vector<4x128xf32>
    %cst_11 = arith.constant dense<0.000000e+00> : vector<8x128xf32>
    %12 = tpu.matmul %10, %11, %cst_11 {dimension_numbers = #tpu.dot_dimension_numbers<[1], [0], [0], [1], [0, 0, 1, 1], [], []>} : vector<8x4xf32>, vector<4x128xf32>, vector<8x128xf32> -> vector<8x128xf32>
    %13 = arith.addf %8, %12 : vector<8x128xf32>
    %c2 = arith.constant 2 : index
    %c0_12 = arith.constant 0 : index
    %c0_13 = arith.constant 0 : index
    %14 = vector.load %arg2[%c2, %c0_12, %c0_13] : memref<3x8x4xf32, #tpu.memory_space<vmem>>, vector<1x8x4xf32>
    %15 = vector.shape_cast %14 : vector<1x8x4xf32> to vector<8x4xf32>
    %16 = vector.extract_strided_slice %4 {offsets = [0, 2], sizes = [4, 128], strides = [1, 1]} : vector<4x130xf32> to vector<4x128xf32>
    %cst_14 = arith.constant dense<0.000000e+00> : vector<8x128xf32>
    %17 = tpu.matmul %15, %16, %cst_14 {dimension_numbers = #tpu.dot_dimension_numbers<[1], [0], [0], [1], [0, 0, 1, 1], [], []>} : vector<8x4xf32>, vector<4x128xf32>, vector<8x128xf32> -> vector<8x128xf32>
    %18 = arith.addf %13, %17 : vector<8x128xf32>
    %cst_15 = arith.constant 0.000000e+00 : f32
    %19 = vector.broadcast %cst_15 : f32 to vector<8x128xf32>
    %20 = arith.maximumf %18, %19 : vector<8x128xf32>
    %c0_16 = arith.constant 0 : index
    %c0_17 = arith.constant 0 : index
    %21 = vector.load %arg3[%c0_16, %c0_17] : memref<8x1xf32, #tpu.memory_space<vmem>>, vector<8x1xf32>
    %22 = vector.broadcast %21 : vector<8x1xf32> to vector<8x128xf32>
    %23 = arith.mulf %20, %22 : vector<8x128xf32>
    %c0_18 = arith.constant 0 : index
    %c0_19 = arith.constant 0 : index
    %24 = vector.load %arg4[%c0_18, %c0_19] : memref<8x1xf32, #tpu.memory_space<vmem>>, vector<8x1xf32>
    %25 = vector.broadcast %24 : vector<8x1xf32> to vector<8x128xf32>
    %26 = arith.addf %23, %25 : vector<8x128xf32>
    %c0_20 = arith.constant 0 : index
    %c0_21 = arith.constant 0 : index
    %c0_22 = arith.constant 0 : index
    %27 = vector.load %arg7[%c0_20, %c0_21, %c0_22] : memref<1x8x128xf32, #tpu.memory_space<vmem>>, vector<1x8x128xf32>
    %28 = vector.shape_cast %27 : vector<1x8x128xf32> to vector<8x128xf32>
    %29 = vector.shape_cast %26 : vector<8x128xf32> to vector<1x8x128xf32>
    tpu.vector_store %arg7[%c0_20, %c0_21, %c0_22], %29 {strides = array<i32>} : memref<1x8x128xf32, #tpu.memory_space<vmem>>, vector<1x8x128xf32>,
    return
  }
  func.func @transform_0(%arg0: i32, %arg1: i32) -> (i32, i32, i32) {
    %c0_i32 = arith.constant 0 : i32
    %c0_i32_0 = arith.constant 0 : i32
    %c0_i32_1 = arith.constant 0 : i32
    %c0_i32_2 = arith.constant 0 : i32
    return %c0_i32, %c0_i32_0, %c0_i32_1 : i32, i32, i32
  }
  func.func @transform_1(%arg0: i32, %arg1: i32) -> (i32, i32) {
    %c0_i32 = arith.constant 0 : i32
    %c0_i32_0 = arith.constant 0 : i32
    %c0_i32_1 = arith.constant 0 : i32
    return %c0_i32, %c0_i32_0 : i32, i32
  }
  func.func @transform_2(%arg0: i32, %arg1: i32) -> (i32, i32) {
    %c0_i32 = arith.constant 0 : i32
    %c0_i32_0 = arith.constant 0 : i32
    %c0_i32_1 = arith.constant 0 : i32
    return %c0_i32, %c0_i32_0 : i32, i32
  }
  func.func @transform_3(%arg0: i32, %arg1: i32) -> (i32, i32, i32) {
    %c0_i32 = arith.constant 0 : i32
    %c0_i32_0 = arith.constant 0 : i32
    return %arg0, %c0_i32, %arg1 : i32, i32, i32
  }
  func.func @transform_4(%arg0: i32, %arg1: i32) -> (i32, i32, i32, i32) {
    %c0_i32 = arith.constant 0 : i32
    %c0_i32_0 = arith.constant 0 : i32
    %c0_i32_1 = arith.constant 0 : i32
    return %arg0, %arg1, %c0_i32, %c0_i32_0 : i32, i32, i32, i32
  }
  func.func @transform_5(%arg0: i32, %arg1: i32) -> (i32, i32, i32) {
    %c0_i32 = arith.constant 0 : i32
    %c0_i32_0 = arith.constant 0 : i32
    return %arg0, %c0_i32, %arg1 : i32, i32, i32
  }
}

</mosaic_0001>

<bundles_post_ra>
// kernel: batch_norm_conv.3
= control target key start
LH: loop header
LB: loop body
LE: loop exit
PB: predicated region body
PF: predicated region fallthrough
CT: control target
= control target key end

     0   :  { %10 = vsyncpa [#allocation3], 0  ;;  %s1008_s0 = inlined_call_operand.vmem [shape: f32[3,8,4], index: 0, kind: input, shape index: {}]   ;;  %s1009_s1 = inlined_call_operand.vmem [shape: f32[8,1], index: 1, kind: input, shape index: {}]   ;;  %s1010_s2 = inlined_call_operand.vmem [shape: f32[8,1], index: 2, kind: input, shape index: {}]   ;;  %s1011_s3 = inlined_call_operand.vmem [shape: f32[2,4,256], index: 3, kind: input, shape index: {}]   ;;  %s1012_s4 = inlined_call_operand.vmem [shape: f32[2,1,4,2], index: 4, kind: input, shape index: {}]   ;;  %s1013_s5 = inlined_call_operand.hbm [shape: f32[2,8,128], index: 5, kind: output, shape index: {}]  }
   0x1   :  { %12 = vsyncpa [#allocation3 + $0x1], 0  ;;  %s869_s18 = smov 0   ;;  %s871_s19 = smov 0  }
   0x2   :  { %s873_s20 = smov 0   ;;  %s875_s21 = smov 0  }
   0x3   :  { %s877_s22 = smov 0   ;;  %s879_s23 = smov 0  }
   0x4 LB: > { %s645_s24 = sadd.s32 4294967295, %s831_s23   ;;  %s646_s25 = sadd.s32 4294967294, %s831_s23   ;;  %s831_s23 = sphi %s879_s23, %s18_s23   ;;  %s827_s22 = sphi %s877_s22, %s1020_s22   ;;  %s823_s21 = sphi %s875_s21, %s1019_s21   ;;  %s819_s20 = sphi %s873_s20, %s1018_s20   ;;  %s815_s19 = sphi %s871_s19, %s1017_s19   ;;  %s811_s18 = sphi %s869_s18, %s1016_s18  }
   0x5   : > { %s30_s26 = sadd.s32 1, %s827_s22  ;;  %s158_s27 = sadd.s32 1, %s819_s20 }
   0x6   : > { %p32_p0 = scmp.ge.s32.totalorder %s30_s26, 2  ;;  %p168_p1 = scmp.ne.s32.totalorder %s819_s20, %s815_s19 }
   0x7   : > { %p169_p2 = scmp.eq.s32.totalorder %s645_s24, 1  ;;  %p174_p3 = scmp.ne.s32.totalorder %s815_s19, %s811_s18 }
   0x8   : > { %s1022_s26 = smov (%p32_p0, %s30_s26), 0  ;;  %p175_p5 = scmp.eq.s32.totalorder %s646_s25, 1 }
   0x9   : > { %p909_p4 = por %p169_p2, %p168_p1  ;;  %s153_s29 = ssub.s32 %s827_s22, %s1022_s26 }
   0xa   : > { %p649_p6 = scmp.ge.s32.totalorder %s831_s23, 1  ;;  %p156_p7 = scmp.eq.s32.totalorder %s153_s29, 0 }
   0xb   : > { %p916_p8 = por %p175_p5, %p174_p3  ;;  %p223_p9 = scmp.lt.s32.totalorder %s831_s23, 3 }
   0xc   : > { %s922_s6 = scalar_select %p156_p7, %s819_s20, %s158_s27  }
   0xd   : > { %p224_p10 = pnand %p649_p6, %p223_p9 }
   0xe   : > { %p261_p11 = scmp.lt.s32.totalorder (!%p224_p10), %s823_s21, 1  ;;  %v833_v0 = vmov (!%p224_p10), 0.0   ;;  %vm834_vm0 = vmmov (!%p224_p10), 0   ;;  %v835_v1 = vmov (!%p224_p10), 0   ;;  %vm293_vm1 = vcmask (!%p224_p10), 1043456   ;;  %v278_v3 = vld [vmem:[%s1008_s0] sm:$0xff] (!%p224_p10) }
   0xf   : > { %227 = sbr.rel (%p224_p10) target bundleno = 382 (0x17e), region = 40  ;;  %678 = vmatprep.subr.mxu0 (!%p224_p10), %v833_v0  ;;  %680 = vmatprep.mubr.msk.f32.mxu0 (!%p224_p10), %vm834_vm0, %v833_v0  ;;  %vm289_vm2 = vcmask (!%p224_p10), 31744   ;;  %s836_s24 = smov (!%p224_p10), 126   ;;  %v526_v5 = vld [vmem:[%s1009_s1] sm:$0xff] (!%p224_p10)  ;;  %vm447_vm3 = vcmask (!%p224_p10), 1031168   ;;  %vm287_vm4 = vcmask (!%p224_p10), 1039360  }
  0x10   : > { %673 = vmatprep.subr.mxu1 (!%p224_p10), %v833_v0  ;;  %675 = vmatprep.mubr.msk.f32.mxu1 (!%p224_p10), %vm834_vm0, %v833_v0  ;;  %s837_s25 = smov (!%p224_p10), 127   ;;  %v533_v6 = vld [vmem:[%s1010_s2] sm:$0xff] (!%p224_p10)  ;;  %v654_v11 = vld [vmem:[%s1008_s0 + $0x8] sm:$0xff] (!%p224_p10)  ;;  %v659_v12 = vld [vmem:[%s1008_s0 + $0x10] sm:$0xff] (!%p224_p10)  ;;  %s258_s13 = sand.u32 (!%p224_p10), 1, %s815_s19  }
  0x11   : > { %751 = vset.pattern.permute.xlu0 (!%p224_p10), %v835_v1  ;;  %752 = vset.pattern.permute.xlu1 (!%p224_p10), %v835_v1  ;;  %s650_s14 = sshll.u32 (!%p224_p10), %s258_s13, 3  ;;  %s542_s29 = scalar_lea.sflag (!%p224_p10), [#allocation3], %s258_s13 }
  0x12   : > { %s260_s16 = scalar_lea.vmem (!%p224_p10), [#allocation2], %s650_s14 }
  0x13   : > { %s556_s17 = sshll.u32 (!%p224_p10), %s260_s16, 4  ;;  %s963_s17 = int_to_ptr.vmem [resolvable:$true] %s556_s17 }
  0x16   : > { %s262_s7 = scalar_select %p261_p11, %s823_s21, 1 }
  0x18   : > { %s666_s8 = sshll.u32 %s262_s7, 3  ;;  %s653_s9 = sshll.u32 %s262_s7, 2 }
  0x19   : > { %s268_s12 = scalar_lea.vmem %s1011_s3, %s666_s8  ;;  %s275_s15 = scalar_lea.vmem %s1012_s4, %s653_s9 }
  0x1a   : > { %v276_v2 = vld [vmem:[%s268_s12] sm:$0xf]  ;;  %s753_s7 = scalar_lea.vmem %s963_s17, 128 }
  0x1b   : > { %443 = vrot.lane.b32.xlu1 %v276_v2, %s836_s24  ;;  %283 = vrot.lane.b32.xlu0 %v276_v2, %s837_s25  ;;  %v277_v4 = vld [vmem:[%s275_s15] sm:$0xf]  ;;  %s663_s15 = sshll.u32 %s823_s21, 7  ;;  %p754_p12 = scmp.ne.s32.totalorder %s963_s17, %s753_s7 }
  0x1c   : > { %679 = vmatpush3.msk.msra.mxu0 %vm293_vm1, %v276_v2  ;;  %s961_s27 = scalar_lea.hbm %s1013_s5, %s663_s15  ;;  %s838_s21 = smov [#allocation2]  }
  0x1d   : > { %681 = vmatmul.mubr.msk.f32.vlgmr.msra.gmra.mrb[0].mxu0 %vm289_vm2, %v278_v3  ;;  %683 = vmatprep.subr.mxu0 %v833_v0  ;;  %p755_p13 = pnand %p754_p12, %p909_p4  ;;  %s757_s8 = sshll.u32 %s838_s21, 4  ;;  %s758_s8 = int_to_ptr.vmem [resolvable:$false] %s757_s8 }
  0x1e   : > { %685 = vmatprep.mubr.msk.f32.mxu0 %vm834_vm0, %v833_v0  ;;  %s759_s9 = scalar_lea.vmem %s758_s8, 256  ;;  %p760_p1 = scmp.lt.s32.totalorder %s963_s17, %s758_s8 }
  0x1f   : > { %445 = vrot.lane.b32.xlu1 %v277_v4, %s836_s24  ;;  %285 = vrot.lane.b32.xlu0 %v277_v4, %s837_s25  ;;  %p756_p0 = pneg %p755_p13  ;;  %p761_p2 = scmp.lt.s32.totalorder %s759_s9, %s753_s7 }
  0x21   : > { %p762_p3 = por %p761_p2, %p760_p1 }
  0x23   : > { %529 = vperm.xlu0 %751, %v526_v5   ;;  %536 = vperm.xlu1 %752, %v533_v6   ;;  %p763_p5 = pnand %p762_p3, %p756_p0 }
  0x8d   : > { %v444_v7 = vpop.permute.xlu1 %443  ;;  %v284_v8 = vpop.permute.xlu0 %283 }
  0x91   : > { %v446_v9 = vpop.permute.xlu1 %445  ;;  %v286_v10 = vpop.permute.xlu0 %285 }
  0x92   : > { %v448_v13 = vsel %vm447_vm3, %v444_v7, %v446_v9  ;;  %v288_v14 = vsel %vm287_vm4, %v284_v8, %v286_v10 }
  0x93   : > { %674 = vmatpush3.msk.msra.mxu1 %vm293_vm1, %v288_v14  ;;  %684 = vmatpush3.msk.msra.mxu0 %vm293_vm1, %v448_v13 }
  0x94   : > { %676 = vmatmul.mubr.msk.f32.vlgmr.msra.gmra.mrb[0].mxu1 %vm289_vm2, %v654_v11  ;;  %686 = vmatmul.mubr.msk.f32.vlgmr.msra.gmra.mrb[0].mxu0 %vm289_vm2, %v659_v12 }
  0xa2   : > { %v530_v20 = vpop.permute.xlu0 %529  ;;  %v537_v22 = vpop.permute.xlu1 %536 }
 0x167   : > { %v362_v15 = vpop.f32.mrb[0].mxu1  ;;  %v520_v16 = vpop.f32.mrb[0].mxu0 }
 0x168   : > { %v688_v17 = vadd.f32 %v520_v16, %v362_v15  ;;  %v687_v18 = vpop.f32.mrb[1].mxu0  ;;  %v677_v19 = vpop.f32.mrb[1].mxu1 }
 0x16a   : > { %v525_v21 = vmax.f32 %v688_v17, 0.0 }
 0x16c   : > { %v532_v23 = vmul.f32 %v530_v20, %v525_v21 }
 0x16e   : > { %v539_v24 = vadd.f32 %v537_v22, %v532_v23 }
 0x170   : > { %540 = vst [vmem:[%s260_s16] sm:$0xff] %v539_v24 }
 0x171   : > { %766 = shalt.err (!%p763_p5)
}
 0x172   : > { %s767_s10 = scalar_lea.hbm %s961_s27, 128  ;;  %s771_s13 = scalar_lea.hbm %s1013_s5, 256 }
 0x173   : > { %p768_p6 = scmp.ne.s32.totalorder %s961_s27, %s767_s10  ;;  %p772_p10 = scmp.lt.u32.totalorder %s961_s27, %s1013_s5 }
 0x174   : > { %p773_p11 = scmp.lt.u32.totalorder %s771_s13, %s767_s10  ;;  %p775_p13 = scmp.lt.u32.totalorder %s767_s10, %s961_s27 }
 0x175   : > { %p769_p7 = pnand %p768_p6, %p909_p4 }
 0x176   : > { %p774_p12 = por %p773_p11, %p772_p10 }
 0x177   : > { %p770_p9 = pneg %p769_p7 }
 0x178   : > { %p776_p0 = por %p775_p13, %p774_p12 }
 0x17a   : > { %p777_p1 = pnand %p776_p0, %p770_p9 }
 0x17c   : > { %780 = shalt.err (!%p777_p1)
}
 0x17d   : > { %691 = dma.vmem_to_hbm [thread:$0]  (%p909_p4), %s963_s17, 128, %s961_s27, %s542_s29  }
 0x17e PF: > { %p697_p2 = scmp.ge.s32.totalorder %s831_s23, 2  ;;  %s568_s16 = sand.u32 1, %s811_s18  }
 0x17f   : > { %s569_s24 = scalar_lea.sflag [#allocation3], %s568_s16 }
 0x180   : > { %p694_p3 = pnand %p697_p2, %p916_p8 }
 0x182   : > { %806 = dma.done.wait (!%p694_p3), %s569_s24, 128  }
 0x183   : > { %808 = vsyncadd (!%p694_p3), %s569_s24, 4294967168  ;;  %s18_s23 = sadd.s32 1, %s831_s23   ;;  %s1016_s18 = smov %s815_s19 }
 0x184   : > { %p15_p5 = scmp.ge.s32.totalorder %s18_s23, 4   ;;  %s1017_s19 = smov %s819_s20 }
 0x185   : > { %s1018_s20 = smov %s922_s6  ;;  %s1019_s21 = smov %s827_s22 }
 0x186   : > { %s1020_s22 = smov %s1022_s26  ;;  %17 = sbr.rel (!%p15_p5) target bundleno = 4 (0x4), region = 80 }
 0x18d   :  { %574 = vsyncpa [#allocation3], 1 }
 0x18e   :  { %576 = vsyncpa [#allocation3 + $0x1], 1 }

// kernel: batch_norm_conv.2
= control target key start
LH: loop header
LB: loop body
LE: loop exit
PB: predicated region body
PF: predicated region fallthrough
CT: control target
= control target key end

     0   :  { %s716_s12 = smov 0   ;;  %s718_s13 = smov 0   ;;  %s778_s0 = inlined_call_operand.vmem [shape: f32[3,8,4], index: 0, kind: input, shape index: {}]   ;;  %s779_s1 = inlined_call_operand.vmem [shape: f32[2,4,256], index: 1, kind: input, shape index: {}]   ;;  %s780_s2 = inlined_call_operand.vmem [shape: f32[2,1,4,2], index: 2, kind: input, shape index: {}]   ;;  %s781_s3 = inlined_call_operand.vmem [shape: f32[2,1,8,2], index: 3, kind: output, shape index: {}]  }
   0x1   :  { %s720_s14 = smov 0  }
   0x2 LB: > { %s25_s15 = sadd.s32 1, %s686_s13  ;;  %p600_p0 = scmp.ge.s32.totalorder %s690_s14, 1  ;;  %s690_s14 = sphi %s720_s14, %s13_s14   ;;  %s686_s13 = sphi %s718_s13, %s783_s13   ;;  %s682_s12 = sphi %s716_s12, %s782_s12  }
   0x3   : > { %p27_p1 = scmp.ge.s32.totalorder %s25_s15, 2  ;;  %p170_p2 = scmp.lt.s32.totalorder %s690_s14, 3 }
   0x5   : > { %s785_s15 = smov (%p27_p1, %s25_s15), 0  ;;  %p171_p3 = pnand %p600_p0, %p170_p2 }
   0x6   : > { %p206_p4 = scmp.lt.s32.totalorder (!%p171_p3), %s682_s12, 1  ;;  %v692_v0 = vmov (!%p171_p3), 0.0   ;;  %vm693_vm0 = vmmov (!%p171_p3), 0   ;;  %vm245_vm1 = vcmask (!%p171_p3), 1043456   ;;  %v230_v2 = vld [vmem:[%s778_s0] sm:$0xff] (!%p171_p3)  ;;  %vm241_vm2 = vcmask (!%p171_p3), 31744  }
   0x7   : > { %174 = sbr.rel (%p171_p3) target bundleno = 648 (0x288), region = 32  ;;  %627 = vmatprep.subr.mxu0 (!%p171_p3), %v692_v0  ;;  %629 = vmatprep.mubr.msk.f32.mxu0 (!%p171_p3), %vm693_vm0, %v692_v0  ;;  %s694_s26 = smov (!%p171_p3), 126   ;;  %vm399_vm3 = vcmask (!%p171_p3), 1031168   ;;  %vm239_vm4 = vcmask (!%p171_p3), 1039360   ;;  %v605_v8 = vld [vmem:[%s778_s0 + $0x8] sm:$0xff] (!%p171_p3)  ;;  %v610_v9 = vld [vmem:[%s778_s0 + $0x10] sm:$0xff] (!%p171_p3)  ;;  %v478_v12 = vlaneseq (!%p171_p3) }
   0x8   : > { %622 = vmatprep.subr.mxu1 (!%p171_p3), %v692_v0  ;;  %624 = vmatprep.mubr.msk.f32.mxu1 (!%p171_p3), %vm693_vm0, %v692_v0  ;;  %s695_s27 = smov (!%p171_p3), 127   ;;  %vm500_vm6 = vcmask (!%p171_p3), 7168   ;;  %vm502_vm7 = vcmask (!%p171_p3), 15368  }
   0x9   : > { %v479_v13 = vand.u32 (!%p171_p3), 127, %v478_v12 }
   0xb   : > { %vm483_vm5 = vcmp.lt.s32.totalorder (!%p171_p3), %v479_v13, 16 }
   0xe   : > { %s787_s12 = smov (!%p206_p4, %s682_s12), 1 }
   0xf   : > { %s615_s16 = sshll.u32 %s787_s12, 3  ;;  %s603_s17 = sshll.u32 %s787_s12, 2 }
  0x10   : > { %s213_s20 = scalar_lea.vmem %s779_s1, %s615_s16  ;;  %s220_s23 = scalar_lea.vmem %s780_s2, %s603_s17 }
  0x11   : > { %v228_v1 = vld [vmem:[%s213_s20] sm:$0xf]  ;;  %s227_s7 = scalar_lea.vmem %s781_s3, %s615_s16 }
  0x12   : > { %395 = vrot.lane.b32.xlu1 %v228_v1, %s694_s26  ;;  %235 = vrot.lane.b32.xlu0 %v228_v1, %s695_s27  ;;  %v229_v3 = vld [vmem:[%s220_s23] sm:$0xf] }
  0x13   : > { %628 = vmatpush3.msk.msra.mxu0 %vm245_vm1, %v228_v1 }
  0x14   : > { %630 = vmatmul.mubr.msk.f32.vlgmr.msra.gmra.mrb[0].mxu0 %vm241_vm2, %v230_v2  ;;  %632 = vmatprep.subr.mxu0 %v692_v0 }
  0x15   : > { %634 = vmatprep.mubr.msk.f32.mxu0 %vm693_vm0, %v692_v0 }
  0x16   : > { %397 = vrot.lane.b32.xlu1 %v229_v3, %s694_s26  ;;  %237 = vrot.lane.b32.xlu0 %v229_v3, %s695_s27 }
  0x84   : > { %v396_v4 = vpop.permute.xlu1 %395  ;;  %v236_v5 = vpop.permute.xlu0 %235 }
  0x88   : > { %v398_v6 = vpop.permute.xlu1 %397  ;;  %v238_v7 = vpop.permute.xlu0 %237 }
  0x89   : > { %v400_v10 = vsel %vm399_vm3, %v396_v4, %v398_v6  ;;  %v240_v11 = vsel %vm239_vm4, %v236_v5, %v238_v7 }
  0x8a   : > { %623 = vmatpush3.msk.msra.mxu1 %vm245_vm1, %v240_v11  ;;  %633 = vmatpush3.msk.msra.mxu0 %vm245_vm1, %v400_v10 }
  0x8b   : > { %625 = vmatmul.mubr.msk.f32.vlgmr.msra.gmra.mrb[0].mxu1 %vm241_vm2, %v605_v8  ;;  %635 = vmatmul.mubr.msk.f32.vlgmr.msra.gmra.mrb[0].mxu0 %vm241_vm2, %v610_v9 }
 0x15e   : > { %v314_v14 = vpop.f32.mrb[0].mxu1  ;;  %v472_v15 = vpop.f32.mrb[0].mxu0 }
 0x15f   : > { %v637_v16 = vadd.f32 %v472_v15, %v314_v14  ;;  %v636_v17 = vpop.f32.mrb[1].mxu0  ;;  %v626_v18 = vpop.f32.mrb[1].mxu1 }
 0x161   : > { %v477_v19 = vmax.f32 %v637_v16, 0.0 }
 0x163   : > { %v489_v20 = vsel %vm483_vm5, %v477_v19, 0.0 }
 0x164   : > { %490 = vadd.xlane.f32.xlu0 %v489_v20 }
 0x1f1   : > { %v491_v21 = vpop.xlane.xlu0 %490 }
 0x1f2   : > { %v494_v22 = vmul.f32 0.0625, %v491_v21  ;;  %501 = vst.msk [vmem:[%s227_s7] sm:$0xff] %vm500_vm6, %v491_v21 }
 0x1f4   : > { %v495_v23 = vsub.f32 %v477_v19, %v494_v22 }
 0x1f6   : > { %v496_v24 = vsel %vm483_vm5, %v495_v23, 0.0 }
 0x1f7   : > { %v497_v25 = vmul.f32 %v496_v24, %v496_v24 }
 0x1f9   : > { %498 = vadd.xlane.f32.xlu1 %v497_v25 }
 0x286   : > { %v499_v26 = vpop.xlane.xlu1 %498 }
 0x287   : > { %503 = vst.msk [vmem:[%s227_s7] sm:$0xff] %vm502_vm7, %v499_v26 }
 0x288 PF: > { %s13_s14 = sadd.s32 1, %s690_s14   ;;  %s782_s12 = smov %s686_s13 }
 0x289   : > { %p10_p5 = scmp.ge.s32.totalorder %s13_s14, 4   ;;  %s783_s13 = smov %s785_s15 }
 0x28b   :  { %12 = sbr.rel (!%p10_p5) target bundleno = 2 (0x2), region = 67 }

</bundles_post_ra>
